<compile_context>
chip_gen: v5e
topology: v5e:2x2
jax: 0.10.0
libtpu: 0.0.40
codegen_flags: <defaults>
</compile_context>

<pallas_src>
import jax
import jax.numpy as jnp
from jax.experimental import pallas as pl
from jax.experimental.pallas import tpu as pltpu


# ----------------------------------------------------------------------------
# Kernel
# ----------------------------------------------------------------------------
def _fused_critics_kernel(s_ref, a_ref, w1s_ref, w1a_ref, b1_ref,
                          w2_ref, b2_ref, w3_ref, b3_ref, out_ref):
    """All critics in one pass: shared-input layer 1 + block-diag layers 2/3."""
    # Layer 1: concat(states, actions) @ W1 expressed as two dots (no concat).
    h1 = jnp.dot(s_ref[...], w1s_ref[...], preferred_element_type=jnp.float32)
    h1 = h1 + jnp.dot(a_ref[...], w1a_ref[...],
                      preferred_element_type=jnp.float32)
    h1 = jnp.maximum(h1 + b1_ref[...], 0.0)                    # (tb, Hp)
    # Layer 2: block-diagonal over critics.
    h2 = jnp.dot(h1, w2_ref[...], preferred_element_type=jnp.float32)
    h2 = jnp.maximum(h2 + b2_ref[...], 0.0)                    # (tb, Hp)
    # Layer 3: block-diagonal projection to all critics' quantiles at once.
    q = jnp.dot(h2, w3_ref[...], preferred_element_type=jnp.float32)
    q = q + b3_ref[...]                                        # (tb, C*Q)
    out_ref[...] = q.astype(out_ref.dtype)


# ----------------------------------------------------------------------------
# Parameter prep (done once, outside the forward path)
# ----------------------------------------------------------------------------
def fuse_params(params, state_dim, lane_multiple=128):
    """Per-critic params -> fused, lane-padded params for the kernel."""
    w1, b1 = params["w1"], params["b1"]    # (C, in_dim, H), (C, 1, H)
    w2, b2 = params["w2"], params["b2"]    # (C, H, H),      (C, 1, H)
    w3, b3 = params["w3"], params["b3"]    # (C, H, Q),      (C, 1, Q)
    C, in_dim, H = w1.shape
    Q = w3.shape[-1]
    CH, CQ = C * H, C * Q
    Hp = ((CH + lane_multiple - 1) // lane_multiple) * lane_multiple
    pad = Hp - CH

    # Layer 1: shared input rows, fused output columns (in_dim, C*H) -> pad Hp.
    w1f = jnp.moveaxis(w1, 0, 1).reshape(in_dim, CH)
    w1f = jnp.pad(w1f, ((0, 0), (0, pad)))
    b1f = jnp.pad(b1.reshape(1, CH), ((0, 0), (0, pad)))
    w1s = w1f[:state_dim]                  # (state_dim,  Hp)
    w1a = w1f[state_dim:]                  # (action_dim, Hp)

    # Layers 2/3: exact block-diagonal (off-diagonal blocks are exact zeros).
    w2f = jax.scipy.linalg.block_diag(*w2)                 # (CH, CH)
    w2f = jnp.pad(w2f, ((0, pad), (0, pad)))               # (Hp, Hp)
    b2f = jnp.pad(b2.reshape(1, CH), ((0, 0), (0, pad)))   # (1, Hp)
    w3f = jax.scipy.linalg.block_diag(*w3)                 # (CH, CQ)
    w3f = jnp.pad(w3f, ((0, pad), (0, 0)))                 # (Hp, CQ)
    b3f = b3.reshape(1, CQ)                                # (1, CQ)

    fused = {"w1s": w1s, "w1a": w1a, "b1": b1f,
             "w2": w2f, "b2": b2f, "w3": w3f, "b3": b3f}
    fused = jax.tree_util.tree_map(lambda x: x.astype(jnp.float32), fused)
    return fused


def _pick_batch_tile(batch):
    """Largest sublane-friendly batch tile that divides the batch exactly."""
    for tb in (512, 256, 128, 64, 32, 16, 8):
        if batch >= tb and batch % tb == 0:
            return tb
    return batch  # small / odd batch: single full-batch block.


# ----------------------------------------------------------------------------
# Forward wrapper
# ----------------------------------------------------------------------------
def quantile_critics_forward(states, actions, fused, n_critics, n_quantiles):
    """Returns (batch, n_critics, n_quantiles), matching the PyTorch module."""
    states = states.astype(jnp.float32)
    actions = actions.astype(jnp.float32)
    B, state_dim = states.shape
    action_dim = actions.shape[-1]
    Hp = fused["w2"].shape[0]
    CQ = n_critics * n_quantiles

    tb = _pick_batch_tile(B)
    grid = (B // tb,)

    flops = 2 * B * ((state_dim + action_dim) * Hp + Hp * Hp + Hp * CQ)
    bytes_accessed = 4 * (states.size + actions.size + B * CQ
                          + sum(int(v.size) for v in fused.values()))
    cost = pl.CostEstimate(flops=flops, transcendentals=0,
                           bytes_accessed=bytes_accessed)

    out = pl.pallas_call(
        _fused_critics_kernel,
        out_shape=jax.ShapeDtypeStruct((B, CQ), jnp.float32),
        grid=grid,
        in_specs=[
            pl.BlockSpec((tb, state_dim), lambda i: (i, 0)),    # states
            pl.BlockSpec((tb, action_dim), lambda i: (i, 0)),   # actions
            pl.BlockSpec((state_dim, Hp), lambda i: (0, 0)),    # w1 (state rows)
            pl.BlockSpec((action_dim, Hp), lambda i: (0, 0)),   # w1 (action rows)
            pl.BlockSpec((1, Hp), lambda i: (0, 0)),            # b1 fused
            pl.BlockSpec((Hp, Hp), lambda i: (0, 0)),           # w2 block-diag
            pl.BlockSpec((1, Hp), lambda i: (0, 0)),            # b2 fused
            pl.BlockSpec((Hp, CQ), lambda i: (0, 0)),           # w3 block-diag
            pl.BlockSpec((1, CQ), lambda i: (0, 0)),            # b3 fused
        ],
        out_specs=pl.BlockSpec((tb, CQ), lambda i: (i, 0)),
        compiler_params=pltpu.CompilerParams(
            dimension_semantics=("parallel",)),
        cost_estimate=cost,
    )(states, actions, fused["w1s"], fused["w1a"], fused["b1"],
      fused["w2"], fused["b2"], fused["w3"], fused["b3"])

    # Lane-dense (B, C*Q) -> (B, C, Q): just a reshape (no transpose needed).
    return out.reshape(B, n_critics, n_quantiles)


# ----------------------------------------------------------------------------
# Init + plain-JAX reference (per-critic, mirrors the PyTorch module exactly)
# ----------------------------------------------------------------------------
def init_params(key, n_critics, in_dim, layer_size, n_quantiles):
    """PyTorch-Linear-style init (uniform +/- 1/sqrt(fan_in)), per critic."""
    def linear(k, c, fan_in, fan_out):
        kw, kb = jax.random.split(k)
        bound = 1.0 / jnp.sqrt(float(fan_in))
        w = jax.random.uniform(kw, (c, fan_in, fan_out), jnp.float32,
                               -bound, bound)
        b = jax.random.uniform(kb, (c, 1, fan_out), jnp.float32,
                               -bound, bound)
        return w, b

    k1, k2, k3 = jax.random.split(key, 3)
    w1, b1 = linear(k1, n_critics, in_dim, layer_size)
    w2, b2 = linear(k2, n_critics, layer_size, layer_size)
    w3, b3 = linear(k3, n_critics, layer_size, n_quantiles)
    return {"w1": w1, "b1": b1, "w2": w2, "b2": b2, "w3": w3, "b3": b3}


def reference_forward(states, actions, params):
    sa = jnp.concatenate([states, actions], axis=-1)
    outs = []
    for c in range(params["w1"].shape[0]):
        h = jax.nn.relu(sa @ params["w1"][c] + params["b1"][c, 0])
        h = jax.nn.relu(h @ params["w2"][c] + params["b2"][c, 0])
        outs.append(h @ params["w3"][c] + params["b3"][c, 0])
    return jnp.stack(outs, axis=1)


# ----------------------------------------------------------------------------
if __name__ == "__main__":
    # obs dim = 12, action dim = 4, layer_size = 32, n_quantiles = 8,
    # n_critics = 3.  batch = 8 so sublanes aren't half-empty.
    batch = 8
    state_dim = 12
    action_dim = 4
    layer_size = 32
    n_quantiles = 8
    n_critics = 3

    key = jax.random.PRNGKey(0)
    kp, ks, ka = jax.random.split(key, 3)
    params = init_params(kp, n_critics, state_dim + action_dim,
                         layer_size, n_quantiles)
    fused = fuse_params(params, state_dim)
    states = jax.random.normal(ks, (batch, state_dim), jnp.float32)
    actions = jax.random.normal(ka, (batch, action_dim), jnp.float32)

    out = quantile_critics_forward(states, actions, fused,
                                   n_critics, n_quantiles)
    out = jax.block_until_ready(out)

    ref = reference_forward(states, actions, params)
    assert out.shape == (batch, n_critics, n_quantiles), out.shape
    assert jnp.allclose(out, ref, atol=1e-5, rtol=1e-5), "mismatch vs reference"

    print("KERNEL_OK")
</pallas_src>

<mosaic_0001>
module attributes {stable_mosaic.version = 11 : i64} {
  func.func @_fused_critics_kernel(%arg0: i32, %arg1: memref<8x12xf32, #tpu.memory_space<vmem>>, %arg2: memref<8x4xf32, #tpu.memory_space<vmem>>, %arg3: memref<12x128xf32, #tpu.memory_space<vmem>>, %arg4: memref<4x128xf32, #tpu.memory_space<vmem>>, %arg5: memref<1x128xf32, #tpu.memory_space<vmem>>, %arg6: memref<128x128xf32, #tpu.memory_space<vmem>>, %arg7: memref<1x128xf32, #tpu.memory_space<vmem>>, %arg8: memref<128x24xf32, #tpu.memory_space<vmem>>, %arg9: memref<1x24xf32, #tpu.memory_space<vmem>>, %arg10: memref<8x24xf32, #tpu.memory_space<vmem>>) attributes {dimension_semantics = [#tpu.dimension_semantics<parallel>], iteration_bounds = array<i64: 1>, scalar_prefetch = 0 : i64, scratch_operands = 0 : i64, tpu.core_type = #tpu.core_type<tc>, window_params = [{transform_indices = @transform_0, window_bounds = array<i64: 8, 12>}, {transform_indices = @transform_1, window_bounds = array<i64: 8, 4>}, {pipeline_mode = #tpu.pipeline_mode<synchronous>, transform_indices = @transform_2, window_bounds = array<i64: 12, 128>}, {pipeline_mode = #tpu.pipeline_mode<synchronous>, transform_indices = @transform_3, window_bounds = array<i64: 4, 128>}, {pipeline_mode = #tpu.pipeline_mode<synchronous>, transform_indices = @transform_4, window_bounds = array<i64: 1, 128>}, {pipeline_mode = #tpu.pipeline_mode<synchronous>, transform_indices = @transform_5, window_bounds = array<i64: 128, 128>}, {pipeline_mode = #tpu.pipeline_mode<synchronous>, transform_indices = @transform_6, window_bounds = array<i64: 1, 128>}, {pipeline_mode = #tpu.pipeline_mode<synchronous>, transform_indices = @transform_7, window_bounds = array<i64: 128, 24>}, {pipeline_mode = #tpu.pipeline_mode<synchronous>, transform_indices = @transform_8, window_bounds = array<i64: 1, 24>}, {transform_indices = @transform_9, window_bounds = array<i64: 8, 24>}]} {
    %c0 = arith.constant 0 : index
    %c0_0 = arith.constant 0 : index
    %0 = vector.load %arg1[%c0, %c0_0] : memref<8x12xf32, #tpu.memory_space<vmem>>, vector<8x12xf32>
    %c0_1 = arith.constant 0 : index
    %c0_2 = arith.constant 0 : index
    %1 = vector.load %arg3[%c0_1, %c0_2] : memref<12x128xf32, #tpu.memory_space<vmem>>, vector<12x128xf32>
    %cst = arith.constant dense<0.000000e+00> : vector<8x128xf32>
    %2 = tpu.matmul %0, %1, %cst {dimension_numbers = #tpu.dot_dimension_numbers<[1], [0], [0], [1], [0, 0, 1, 1], [], []>} : vector<8x12xf32>, vector<12x128xf32>, vector<8x128xf32> -> vector<8x128xf32>
    %c0_3 = arith.constant 0 : index
    %c0_4 = arith.constant 0 : index
    %3 = vector.load %arg2[%c0_3, %c0_4] : memref<8x4xf32, #tpu.memory_space<vmem>>, vector<8x4xf32>
    %c0_5 = arith.constant 0 : index
    %c0_6 = arith.constant 0 : index
    %4 = vector.load %arg4[%c0_5, %c0_6] : memref<4x128xf32, #tpu.memory_space<vmem>>, vector<4x128xf32>
    %cst_7 = arith.constant dense<0.000000e+00> : vector<8x128xf32>
    %5 = tpu.matmul %3, %4, %cst_7 {dimension_numbers = #tpu.dot_dimension_numbers<[1], [0], [0], [1], [0, 0, 1, 1], [], []>} : vector<8x4xf32>, vector<4x128xf32>, vector<8x128xf32> -> vector<8x128xf32>
    %6 = arith.addf %2, %5 : vector<8x128xf32>
    %c0_8 = arith.constant 0 : index
    %c0_9 = arith.constant 0 : index
    %7 = vector.load %arg5[%c0_8, %c0_9] : memref<1x128xf32, #tpu.memory_space<vmem>>, vector<1x128xf32>
    %8 = vector.broadcast %7 : vector<1x128xf32> to vector<8x128xf32>
    %9 = arith.addf %6, %8 : vector<8x128xf32>
    %cst_10 = arith.constant 0.000000e+00 : f32
    %10 = vector.broadcast %cst_10 : f32 to vector<8x128xf32>
    %11 = arith.maximumf %9, %10 : vector<8x128xf32>
    %c0_11 = arith.constant 0 : index
    %c0_12 = arith.constant 0 : index
    %12 = vector.load %arg6[%c0_11, %c0_12] : memref<128x128xf32, #tpu.memory_space<vmem>>, vector<128x128xf32>
    %cst_13 = arith.constant dense<0.000000e+00> : vector<8x128xf32>
    %13 = tpu.matmul %11, %12, %cst_13 {dimension_numbers = #tpu.dot_dimension_numbers<[1], [0], [0], [1], [0, 0, 1, 1], [], []>} : vector<8x128xf32>, vector<128x128xf32>, vector<8x128xf32> -> vector<8x128xf32>
    %c0_14 = arith.constant 0 : index
    %c0_15 = arith.constant 0 : index
    %14 = vector.load %arg7[%c0_14, %c0_15] : memref<1x128xf32, #tpu.memory_space<vmem>>, vector<1x128xf32>
    %15 = vector.broadcast %14 : vector<1x128xf32> to vector<8x128xf32>
    %16 = arith.addf %13, %15 : vector<8x128xf32>
    %cst_16 = arith.constant 0.000000e+00 : f32
    %17 = vector.broadcast %cst_16 : f32 to vector<8x128xf32>
    %18 = arith.maximumf %16, %17 : vector<8x128xf32>
    %c0_17 = arith.constant 0 : index
    %c0_18 = arith.constant 0 : index
    %19 = vector.load %arg8[%c0_17, %c0_18] : memref<128x24xf32, #tpu.memory_space<vmem>>, vector<128x24xf32>
    %cst_19 = arith.constant dense<0.000000e+00> : vector<8x24xf32>
    %20 = tpu.matmul %18, %19, %cst_19 {dimension_numbers = #tpu.dot_dimension_numbers<[1], [0], [0], [1], [0, 0, 1, 1], [], []>} : vector<8x128xf32>, vector<128x24xf32>, vector<8x24xf32> -> vector<8x24xf32>
    %c0_20 = arith.constant 0 : index
    %c0_21 = arith.constant 0 : index
    %21 = vector.load %arg9[%c0_20, %c0_21] : memref<1x24xf32, #tpu.memory_space<vmem>>, vector<1x24xf32>
    %22 = vector.broadcast %21 : vector<1x24xf32> to vector<8x24xf32>
    %23 = arith.addf %20, %22 : vector<8x24xf32>
    %c0_22 = arith.constant 0 : index
    %c0_23 = arith.constant 0 : index
    %24 = vector.load %arg10[%c0_22, %c0_23] : memref<8x24xf32, #tpu.memory_space<vmem>>, vector<8x24xf32>
    tpu.vector_store %arg10[%c0_22, %c0_23], %23 {strides = array<i32>} : memref<8x24xf32, #tpu.memory_space<vmem>>, vector<8x24xf32>,
    return
  }
  func.func @transform_0(%arg0: i32) -> (i32, i32) {
    %c0_i32 = arith.constant 0 : i32
    %c0_i32_0 = arith.constant 0 : i32
    return %arg0, %c0_i32 : i32, i32
  }
  func.func @transform_1(%arg0: i32) -> (i32, i32) {
    %c0_i32 = arith.constant 0 : i32
    %c0_i32_0 = arith.constant 0 : i32
    return %arg0, %c0_i32 : i32, i32
  }
  func.func @transform_2(%arg0: i32) -> (i32, i32) {
    %c0_i32 = arith.constant 0 : i32
    %c0_i32_0 = arith.constant 0 : i32
    %c0_i32_1 = arith.constant 0 : i32
    return %c0_i32, %c0_i32_0 : i32, i32
  }
  func.func @transform_3(%arg0: i32) -> (i32, i32) {
    %c0_i32 = arith.constant 0 : i32
    %c0_i32_0 = arith.constant 0 : i32
    %c0_i32_1 = arith.constant 0 : i32
    return %c0_i32, %c0_i32_0 : i32, i32
  }
  func.func @transform_4(%arg0: i32) -> (i32, i32) {
    %c0_i32 = arith.constant 0 : i32
    %c0_i32_0 = arith.constant 0 : i32
    %c0_i32_1 = arith.constant 0 : i32
    return %c0_i32, %c0_i32_0 : i32, i32
  }
  func.func @transform_5(%arg0: i32) -> (i32, i32) {
    %c0_i32 = arith.constant 0 : i32
    %c0_i32_0 = arith.constant 0 : i32
    %c0_i32_1 = arith.constant 0 : i32
    return %c0_i32, %c0_i32_0 : i32, i32
  }
  func.func @transform_6(%arg0: i32) -> (i32, i32) {
    %c0_i32 = arith.constant 0 : i32
    %c0_i32_0 = arith.constant 0 : i32
    %c0_i32_1 = arith.constant 0 : i32
    return %c0_i32, %c0_i32_0 : i32, i32
  }
  func.func @transform_7(%arg0: i32) -> (i32, i32) {
    %c0_i32 = arith.constant 0 : i32
    %c0_i32_0 = arith.constant 0 : i32
    %c0_i32_1 = arith.constant 0 : i32
    return %c0_i32, %c0_i32_0 : i32, i32
  }
  func.func @transform_8(%arg0: i32) -> (i32, i32) {
    %c0_i32 = arith.constant 0 : i32
    %c0_i32_0 = arith.constant 0 : i32
    %c0_i32_1 = arith.constant 0 : i32
    return %c0_i32, %c0_i32_0 : i32, i32
  }
  func.func @transform_9(%arg0: i32) -> (i32, i32) {
    %c0_i32 = arith.constant 0 : i32
    %c0_i32_0 = arith.constant 0 : i32
    return %arg0, %c0_i32 : i32, i32
  }
}

</mosaic_0001>

<bundles_post_ra>
// kernel: tpu_custom_call.1
= control target key start
LH: loop header
LB: loop body
LE: loop exit
PB: predicated region body
PF: predicated region fallthrough
CT: control target
= control target key end

     0   :  { %vm42_vm0 = vcmask 1043456   ;;  %vm38_vm1 = vcmask 31744   ;;  %vm66_vm2 = vcmask 97280   ;;  %s406_s0 = inlined_call_operand.vmem [shape: f32[8,12], index: 0, kind: input, shape index: {}]   ;;  %s407_s1 = inlined_call_operand.vmem [shape: f32[8,4], index: 1, kind: input, shape index: {}]   ;;  %s408_s2 = inlined_call_operand.vmem [shape: f32[12,128], index: 2, kind: input, shape index: {}]   ;;  %s409_s3 = inlined_call_operand.vmem [shape: f32[4,128], index: 3, kind: input, shape index: {}]   ;;  %s410_s4 = inlined_call_operand.vmem [shape: f32[1,128], index: 4, kind: input, shape index: {}]   ;;  %s411_s5 = inlined_call_operand.vmem [shape: f32[128,128], index: 5, kind: input, shape index: {}]   ;;  %s412_s6 = inlined_call_operand.vmem [shape: f32[1,128], index: 6, kind: input, shape index: {}]   ;;  %s413_s7 = inlined_call_operand.vmem [shape: f32[128,24], index: 7, kind: input, shape index: {}]   ;;  %s414_s8 = inlined_call_operand.vmem [shape: f32[1,24], index: 8, kind: input, shape index: {}]   ;;  %s415_s9 = inlined_call_operand.hbm [shape: f32[8,24], index: 9, kind: output, shape index: {}]  }
   0x1   :  { %v35_v0 = vld [vmem:[%s408_s2 + $0x8] sm:$0xf]  ;;  %v37_v1 = vld [vmem:[%s409_s3] sm:$0xf]  ;;  %v114_v5 = vld [vmem:[%s411_s5 + $0x78] sm:$0xff] }
   0x2   :  { %v34_v2 = vld [vmem:[%s408_s2] sm:$0xff]  ;;  %200 = vmatpush.msk.msra.mxu1 %vm42_vm0, %v35_v0  ;;  %198 = vmatpush.msk.msra.mxu0 %vm42_vm0, %v37_v1  ;;  %v113_v6 = vld [vmem:[%s411_s5 + $0x70] sm:$0xff]  ;;  %v112_v7 = vld [vmem:[%s411_s5 + $0x68] sm:$0xff] }
   0x3   :  { %v36_v3 = vld [vmem:[%s407_s1] sm:$0xff]  ;;  %119 = vmatpush.msra.mxu2 %v114_v5 }
   0x4   :  { %v33_v4 = vld [vmem:[%s406_s0] sm:$0xff]  ;;  %199 = vmatmul.msk.f32.vlgmr.msra.gmra.mxu0 %vm38_vm1, %v36_v3  ;;  %88 = vmatpush.msra.mxu1 %v34_v2 }
   0x5   :  { %201 = vmatmul.msk.f32.vlgmr.msra.gmra.mxu1 %vm66_vm2, %v33_v4  ;;  %120 = vmatpush.msra.mxu2 %v113_v6  ;;  %v111_v8 = vld [vmem:[%s411_s5 + $0x60] sm:$0xff] }
   0x7   :  { %121 = vmatpush.msra.mxu2 %v112_v7 }
   0x8   :  { %14 = vsyncpa [#allocation3], 0  ;;  %v110_v9 = vld [vmem:[%s411_s5 + $0x58] sm:$0xff]  ;;  %v109_v10 = vld [vmem:[%s411_s5 + $0x50] sm:$0xff]  ;;  %s232_s11 = smov [#allocation2]   ;;  %s189_s15 = sshll.u32 %s415_s9, 4  ;;  %s190_s15 = int_to_ptr.hbm [resolvable:$true] %s189_s15 }
   0x9   :  { %122 = vmatpush.msra.mxu2 %v111_v8  ;;  %v108_v11 = vld [vmem:[%s411_s5 + $0x48] sm:$0xff]  ;;  %v107_v12 = vld [vmem:[%s411_s5 + $0x40] sm:$0xff]  ;;  %v106_v13 = vld [vmem:[%s411_s5 + $0x38] sm:$0xff]  ;;  %s187_s12 = sshll.u32 %s232_s11, 4  ;;  %vm180_vm3 = vcmask 195584   ;;  %s188_s12 = int_to_ptr.vmem [resolvable:$true] %s187_s12 }
   0xa   :  { %v105_v14 = vld [vmem:[%s411_s5 + $0x30] sm:$0xff]  ;;  %v104_v15 = vld [vmem:[%s411_s5 + $0x28] sm:$0xff]  ;;  %v103_v16 = vld [vmem:[%s411_s5 + $0x20] sm:$0xff] }
   0xb   :  { %123 = vmatpush.msra.mxu2 %v110_v9  ;;  %v102_v17 = vld [vmem:[%s411_s5 + $0x18] sm:$0xff]  ;;  %v101_v18 = vld [vmem:[%s411_s5 + $0x10] sm:$0xff]  ;;  %v100_v19 = vld [vmem:[%s411_s5 + $0x8] sm:$0xff] }
   0xc   :  { %v99_v20 = vld [vmem:[%s411_s5] sm:$0xff]  ;;  %v155_v21 = vld [vmem:[%s413_s7 + $0x78] sm:$0xff]  ;;  %v154_v22 = vld [vmem:[%s413_s7 + $0x70] sm:$0xff] }
   0xd   :  { %124 = vmatpush.msra.mxu2 %v109_v10  ;;  %160 = vmatpush.msra.mxu3 %v155_v21  ;;  %v153_v23 = vld [vmem:[%s413_s7 + $0x68] sm:$0xff]  ;;  %v152_v24 = vld [vmem:[%s413_s7 + $0x60] sm:$0xff]  ;;  %v151_v25 = vld [vmem:[%s413_s7 + $0x58] sm:$0xff] }
   0xe   :  { %v150_v26 = vld [vmem:[%s413_s7 + $0x50] sm:$0xff]  ;;  %v149_v27 = vld [vmem:[%s413_s7 + $0x48] sm:$0xff]  ;;  %v148_v28 = vld [vmem:[%s413_s7 + $0x40] sm:$0xff] }
   0xf   :  { %125 = vmatpush.msra.mxu2 %v108_v11  ;;  %161 = vmatpush.msra.mxu3 %v154_v22  ;;  %v147_v29 = vld [vmem:[%s413_s7 + $0x38] sm:$0xff]  ;;  %v146_v30 = vld [vmem:[%s413_s7 + $0x30] sm:$0xff]  ;;  %v145_v31 = vld [vmem:[%s413_s7 + $0x28] sm:$0xff] }
  0x10   :  { %v144_v32 = vld [vmem:[%s413_s7 + $0x20] sm:$0xff]  ;;  %v143_v33 = vld [vmem:[%s413_s7 + $0x18] sm:$0xff]  ;;  %v142_v40 = vld [vmem:[%s413_s7 + $0x10] sm:$0xff] }
  0x11   :  { %126 = vmatpush.msra.mxu2 %v107_v12  ;;  %162 = vmatpush.msra.mxu3 %v153_v23  ;;  %v203_v35 = vld [vmem:[%s410_s4] ss:$0 sm:$0xff]  ;;  %v141_v41 = vld [vmem:[%s413_s7 + $0x8] sm:$0xff] }
  0x12   :  { %v140_v42 = vld [vmem:[%s413_s7] sm:$0xff] }
  0x13   :  { %127 = vmatpush.msra.mxu2 %v106_v13  ;;  %163 = vmatpush.msra.mxu3 %v152_v24  ;;  %v204_v43 = vld [vmem:[%s412_s6] ss:$0 sm:$0xff] }
  0x14   :  { %v205_v47 = vld [vmem:[%s414_s8] ss:$0 sm:$0xff] }
  0x15   :  { %128 = vmatpush.msra.mxu2 %v105_v14  ;;  %164 = vmatpush.msra.mxu3 %v151_v25 }
  0x17   :  { %129 = vmatpush.msra.mxu2 %v104_v15  ;;  %165 = vmatpush.msra.mxu3 %v150_v26 }
  0x19   :  { %130 = vmatpush.msra.mxu2 %v103_v16  ;;  %166 = vmatpush.msra.mxu3 %v149_v27 }
  0x1b   :  { %131 = vmatpush.msra.mxu2 %v102_v17  ;;  %167 = vmatpush.msra.mxu3 %v148_v28 }
  0x1d   :  { %132 = vmatpush.msra.mxu2 %v101_v18  ;;  %168 = vmatpush.msra.mxu3 %v147_v29 }
  0x1f   :  { %133 = vmatpush.msra.mxu2 %v100_v19  ;;  %169 = vmatpush.msra.mxu3 %v146_v30 }
  0x21   :  { %134 = vmatpush.msra.mxu2 %v99_v20  ;;  %170 = vmatpush.msra.mxu3 %v145_v31 }
  0x23   :  { %171 = vmatpush.msra.mxu3 %v144_v32 }
  0x25   :  { %172 = vmatpush.msra.mxu3 %v143_v33 }
  0x27   :  { %173 = vmatpush.msra.mxu3 %v142_v40 }
  0x29   :  { %174 = vmatpush.msra.mxu3 %v141_v41 }
  0x2b   :  { %175 = vmatpush.msra.mxu3 %v140_v42 }
  0x81   :  { %v63_v34 = vpop.f32.mrf.mxu0 }
  0x82   :  { %v90_v36 = vpop.f32.mrf.mxu1 }
  0x83   :  { %v91_v37 = vadd.f32 %v90_v36, %v63_v34 }
  0x85   :  { %v97_v38 = vadd.f32 %v203_v35, %v91_v37 }
  0x87   :  { %v98_v39 = vmax.f32 %v97_v38, 0.0 }
  0x89   :  { %135 = vmatmul.f32.vlgmr.msra.gmra.mxu2 %v98_v39 }
 0x10c   :  { %v136_v44 = vpop.f32.mrf.mxu2 }
 0x10d   :  { %v137_v45 = vadd.f32 %v204_v43, %v136_v44 }
 0x10f   :  { %v139_v46 = vmax.f32 %v137_v45, 0.0 }
 0x111   :  { %176 = vmatmul.f32.vlgmr.msra.gmra.mxu3 %v139_v46 }
 0x194   :  { %v177_v48 = vpop.f32.mrf.mxu3 }
 0x195   :  { %v178_v49 = vadd.f32 %v205_v47, %v177_v48 }
 0x197   :  { %181 = vst.msk [vmem:[#allocation2] sm:$0xff] %vm180_vm3, %v178_v49 }
 0x198   :  { %192 = dma.vmem_to_hbm [thread:$0]  %s188_s12, 128, %s190_s15, [#allocation3]  }
 0x199   :  { %230 = dma.done.wait [#allocation3], 128  }
 0x19a   :  { %231 = vsyncadd [#allocation3], 4294967168 }
 0x19b   :  { %197 = vsyncpa [#allocation3], 1 }

</bundles_post_ra>
